<compile_context>
chip_gen: v7x
topology: tpu7x:2x2x1
jax: 0.10.0
libtpu: 0.0.40
codegen_flags: <defaults>
</compile_context>

<pallas_src>
import functools
import math

import jax
import jax.numpy as jnp
from jax.experimental import pallas as pl
from jax.experimental.pallas import tpu as pltpu


_INV_SQRT2 = 1.0 / math.sqrt(2.0)


def _gelu(y, approximate: bool):
    if approximate:
        # tanh approximation lowers to the EUP slot (cheaper epilogue); slightly different
        # numerics than nn.GELU()'s exact erf, so it is off by default.
        return jax.nn.gelu(y, approximate=True)
    return 0.5 * y * (1.0 + jax.lax.erf(y * _INV_SQRT2))


def _mlp_fused_kernel(*refs, residual: bool, compute_dtype, approximate_gelu: bool):
    """Fast path: grid = (M, N); full-K weight panel resident in VMEM, no accumulator scratch."""
    if residual:
        x_ref, w_ref, b_ref, xres_ref, o_ref = refs
    else:
        x_ref, w_ref, b_ref, o_ref = refs
        xres_ref = None

    xm = x_ref[...].astype(compute_dtype)          # on-chip cast (VPU slot), not a wrapper pass
    y = jnp.dot(xm, w_ref[...], preferred_element_type=jnp.float32)
    y = y + b_ref[...]                             # bias already f32 (hoisted cast)
    y = _gelu(y, approximate_gelu)
    if residual:
        y = y + xres_ref[...].astype(jnp.float32)  # full-precision residual
    o_ref[...] = y.astype(o_ref.dtype)


def _mlp_ktiled_kernel(*refs, residual: bool, compute_dtype, approximate_gelu: bool):
    """Fallback: grid = (M, N, K) with K innermost; f32 VMEM accumulator."""
    if residual:
        x_ref, w_ref, b_ref, xres_ref, o_ref, acc_ref = refs
    else:
        x_ref, w_ref, b_ref, o_ref, acc_ref = refs
        xres_ref = None

    k = pl.program_id(2)

    @pl.when(k == 0)
    def _init():
        acc_ref[...] = jnp.zeros_like(acc_ref)

    xm = x_ref[...].astype(compute_dtype)
    acc_ref[...] += jnp.dot(xm, w_ref[...], preferred_element_type=jnp.float32)

    @pl.when(k == pl.num_programs(2) - 1)
    def _finalize():
        y = acc_ref[...] + b_ref[...]
        y = _gelu(y, approximate_gelu)
        if residual:
            y = y + xres_ref[...].astype(jnp.float32)
        o_ref[...] = y.astype(o_ref.dtype)


def _round_up(x: int, m: int) -> int:
    return -(-x // m) * m


def _vmem_capacity_bytes() -> int:
    try:
        return int(pltpu.get_tpu_info().vmem_capacity_bytes)
    except Exception:
        return 64 * 1024 * 1024  # conservative fallback (v7x per-TensorCore VMEM)


def _pick_tile_n(out_dim: int, target: int) -> int:
    # Lane (last) dim of blocks: multiple of 128 or the full array dim.
    return out_dim if out_dim <= target else target


def _pick_tile_m(n: int, target: int) -> int:
    # Sublane dim of blocks: multiple of 8 or the full array dim.
    if n <= target:
        if n > 256:
            # Prefer >=2 M blocks so both v7x TensorCores get work (no-op on v5e/v6e).
            return min(target, _round_up(-(-n // 2), 8))
        return n
    return target


def _pick_tile_k(in_dim: int, target: int):
    """Returns (tk, k_pad): K tile size and zero-padding so tk divides the padded K."""
    if in_dim <= target:
        return in_dim, 0
    for cand in (1024, 512, 256):   # 256-multiples match the 256-wide v6e/v7x MXU
        if cand <= target and in_dim % cand == 0:
            return cand, 0
    tk = min(256, target)
    return tk, _round_up(in_dim, tk) - in_dim


def mlp_block(x: jax.Array, w: jax.Array, b: jax.Array, *,
              residual: bool = False,
              matmul_dtype=jnp.bfloat16,
              tile_m: int = 512, tile_n: int = 1024, tile_k: int = 1024,
              approximate_gelu: bool = False,
              force_k_grid: bool = False) -> jax.Array:
    """Pallas equivalent of MLP_Block(in_dim, out_dim).forward with default ctor args.

    x: [N, in_dim]   w: [in_dim, out_dim]   b: [out_dim]
    matmul_dtype: MXU input dtype (default bf16; accumulation is always f32).  Pass None for a
      pure-f32 matmul (slower; used for the tight reference check in the demo).
    """
    n, in_dim = x.shape
    k_dim, out_dim = w.shape
    assert k_dim == in_dim, "weight must be [in_dim, out_dim]"
    if in_dim != out_dim:
        residual = False  # mirrors MLP_Block.__init__

    out_dtype = x.dtype
    compute_dtype = jnp.dtype(matmul_dtype) if matmul_dtype is not None else jnp.dtype(x.dtype)

    # Weight cast once here (in production, persist W in bf16 so this never appears per call).
    # Activations are NOT pre-cast: the kernel casts the x tile on-chip.
    w_mm = w if w.dtype == compute_dtype else w.astype(compute_dtype)
    b2 = b.reshape(1, out_dim).astype(jnp.float32)  # hoisted f32 cast

    x_item = jnp.dtype(x.dtype).itemsize
    w_item = jnp.dtype(w_mm.dtype).itemsize
    o_item = jnp.dtype(out_dtype).itemsize

    # Per-generation VMEM budget (v5e/v6e: 128 MiB physical, v7x: 64 MiB per TensorCore).
    vmem_cap = _vmem_capacity_bytes()
    vmem_limit = min((vmem_cap * 3) // 4, 64 * 1024 * 1024)
    tile_budget = vmem_limit // 2  # headroom for double-buffering bookkeeping + compiler scratch

    tm = _pick_tile_m(n, tile_m)
    tn = _pick_tile_n(out_dim, tile_n)

    def footprint(tm_, tn_, tk_, with_acc):
        # Double-buffered input/output tiles (+ optional single f32 accumulator).
        fp = 2 * (tm_ * tk_ * x_item + tk_ * tn_ * w_item + tn_ * 4 + tm_ * tn_ * o_item)
        if residual:
            fp += 2 * tm_ * tn_ * x_item
        if with_acc:
            fp += tm_ * tn_ * 4
        return fp

    # Shrink tn / tm (keeping 128/8 alignment) until at least the K-tiled config fits the budget.
    tk_probe = min(tile_k, in_dim)
    while footprint(tm, tn, tk_probe, with_acc=True) > tile_budget:
        if tn > 128:
            tn = max(128, (tn // 2) // 128 * 128)
        elif tm > 128:
            tm = max(128, (tm // 2) // 8 * 8)
        else:
            break

    grid_m = pl.cdiv(n, tm)
    grid_n = pl.cdiv(out_dim, tn)

    kernel_kwargs = dict(residual=residual, compute_dtype=compute_dtype,
                         approximate_gelu=approximate_gelu)

    flops = 2 * n * in_dim * out_dim + (n * out_dim if residual else 0)
    bytes_accessed = (grid_n * n * in_dim * x_item           # x refetched once per N block
                      + grid_m * in_dim * out_dim * w_item   # W refetched once per M block
                      + grid_m * out_dim * 4                 # bias refetch
                      + n * out_dim * o_item
                      + (n * out_dim * x_item if residual else 0))
    cost = pl.CostEstimate(flops=flops, transcendentals=n * out_dim,
                           bytes_accessed=bytes_accessed)

    use_fast = (not force_k_grid) and footprint(tm, tn, in_dim, with_acc=False) <= tile_budget

    if use_fast:
        # ---- Fast path: full-K weight panel, 2-D grid, no accumulator / K machinery. ----
        in_specs = [
            pl.BlockSpec((tm, in_dim), lambda i, j: (i, 0)),    # x row panel, full K
            pl.BlockSpec((in_dim, tn), lambda i, j: (0, j)),    # W column panel, full K
            pl.BlockSpec((1, tn), lambda i, j: (0, j)),         # bias row tile
        ]
        args = [x, w_mm, b2]
        if residual:
            in_specs.append(pl.BlockSpec((tm, tn), lambda i, j: (i, j)))
            args.append(x)                                      # full-precision residual input
        return pl.pallas_call(
            functools.partial(_mlp_fused_kernel, **kernel_kwargs),
            out_shape=jax.ShapeDtypeStruct((n, out_dim), out_dtype),
            grid_spec=pltpu.PrefetchScalarGridSpec(
                num_scalar_prefetch=0,
                grid=(grid_m, grid_n),
                in_specs=in_specs,
                out_specs=pl.BlockSpec((tm, tn), lambda i, j: (i, j)),
            ),
            compiler_params=pltpu.CompilerParams(
                dimension_semantics=("parallel", "parallel"),
                vmem_limit_bytes=vmem_limit,
            ),
            cost_estimate=cost,
        )(*args)

    # ---- K-tiled fallback (very wide in_dim, or forced for testing). ----
    tk, k_pad = _pick_tile_k(in_dim, tile_k)
    x_mm = x
    if k_pad:
        # Zero-padded K contributes nothing to the accumulator, so the result is exact.
        # TODO(synk): mask the tail K tile in-kernel instead of this extra HBM padding pass.
        x_mm = jnp.pad(x, ((0, 0), (0, k_pad)))
        w_mm = jnp.pad(w_mm, ((0, k_pad), (0, 0)))
    k_total = in_dim + k_pad

    in_specs = [
        pl.BlockSpec((tm, tk), lambda i, j, k: (i, k)),   # x  (M, K) tile
        pl.BlockSpec((tk, tn), lambda i, j, k: (k, j)),   # W  (K, N) tile
        pl.BlockSpec((1, tn), lambda i, j, k: (0, j)),    # bias row tile
    ]
    args = [x_mm, w_mm, b2]
    if residual:
        in_specs.append(pl.BlockSpec((tm, tn), lambda i, j, k: (i, j)))
        args.append(x)                                    # original, un-padded, full precision

    return pl.pallas_call(
        functools.partial(_mlp_ktiled_kernel, **kernel_kwargs),
        out_shape=jax.ShapeDtypeStruct((n, out_dim), out_dtype),
        grid_spec=pltpu.PrefetchScalarGridSpec(
            num_scalar_prefetch=0,
            grid=(grid_m, grid_n, k_total // tk),
            in_specs=in_specs,
            out_specs=pl.BlockSpec((tm, tn), lambda i, j, k: (i, j)),
            scratch_shapes=[pltpu.VMEM((tm, tn), jnp.float32)],
        ),
        compiler_params=pltpu.CompilerParams(
            dimension_semantics=("parallel", "parallel", "arbitrary"),
            vmem_limit_bytes=vmem_limit,
        ),
        cost_estimate=cost,
    )(*args)


def _reference(x, w, b, residual=False):
    y = jnp.dot(x, w, precision=jax.lax.Precision.HIGHEST) + b
    y = 0.5 * y * (1.0 + jax.lax.erf(y * _INV_SQRT2))
    if residual and x.shape[-1] == w.shape[-1]:
        y = y + x
    return y


if __name__ == "__main__":
    keys = jax.random.split(jax.random.PRNGKey(0), 9)

    # --- Small shapes consistent with the module (single-block fast path) ---
    batch, in_dim, out_dim = 16, 32, 32
    bound = 1.0 / math.sqrt(in_dim)
    x = jax.random.normal(keys[0], (batch, in_dim), dtype=jnp.float32)
    w = jax.random.uniform(keys[1], (in_dim, out_dim), minval=-bound, maxval=bound,
                           dtype=jnp.float32)
    b = jax.random.uniform(keys[2], (out_dim,), minval=-bound, maxval=bound,
                           dtype=jnp.float32)
    ref = _reference(x, w, b)

    # f32 MXU path: tight check against the exact-erf reference.
    out_f32 = jax.block_until_ready(mlp_block(x, w, b, matmul_dtype=None))
    assert out_f32.shape == (batch, out_dim)
    assert jnp.allclose(out_f32, ref, atol=1e-5, rtol=1e-5), "mismatch (f32 fast path)"

    # Residual path (only active when in_dim == out_dim, as in the PyTorch module).
    out_res = jax.block_until_ready(mlp_block(x, w, b, residual=True, matmul_dtype=None))
    ref_res = _reference(x, w, b, residual=True)
    assert jnp.allclose(out_res, ref_res, atol=1e-5, rtol=1e-5), "mismatch (residual)"

    # Default bf16 MXU path (f32 accumulation): looser tolerance vs the f32 reference.
    out_bf16 = jax.block_until_ready(mlp_block(x, w, b))
    assert jnp.allclose(out_bf16, ref, atol=3e-2, rtol=3e-2), "mismatch (bf16 fast path)"

    # --- Larger shape: bf16 fast path, full-K weight panel, 2 M blocks (v7x-friendly) ---
    n2, in2, out2 = 384, 1024, 640
    bound2 = 1.0 / math.sqrt(in2)
    x2 = jax.random.normal(keys[3], (n2, in2), dtype=jnp.float32)
    w2 = jax.random.uniform(keys[4], (in2, out2), minval=-bound2, maxval=bound2,
                            dtype=jnp.float32)
    b2v = jax.random.uniform(keys[5], (out2,), minval=-bound2, maxval=bound2,
                             dtype=jnp.float32)
    out2_arr = jax.block_until_ready(mlp_block(x2, w2, b2v))
    ref2 = _reference(x2, w2, b2v)
    assert out2_arr.shape == (n2, out2)
    assert jnp.allclose(out2_arr, ref2, atol=3e-2, rtol=3e-2), "mismatch (bf16 fast path, tiled)"

    # --- K-grid fallback with an awkward in_dim (1100): exercises zero-padded K tiling ---
    n3, in3, out3 = 384, 1100, 640
    bound3 = 1.0 / math.sqrt(in3)
    x3 = jax.random.normal(keys[6], (n3, in3), dtype=jnp.float32)
    w3 = jax.random.uniform(keys[7], (in3, out3), minval=-bound3, maxval=bound3,
                            dtype=jnp.float32)
    b3 = jax.random.uniform(keys[8], (out3,), minval=-bound3, maxval=bound3,
                            dtype=jnp.float32)
    out3_arr = jax.block_until_ready(mlp_block(x3, w3, b3, matmul_dtype=None,
                                               force_k_grid=True))
    ref3 = _reference(x3, w3, b3)
    assert out3_arr.shape == (n3, out3)
    assert jnp.allclose(out3_arr, ref3, atol=1e-3, rtol=1e-3), "mismatch (K-tiled path)"

    print("KERNEL_OK")
</pallas_src>

<mosaic_0001>
module attributes {stable_mosaic.version = 11 : i64} {
  func.func @_mlp_fused_kernel(%arg0: i32, %arg1: i32, %arg2: memref<16x32xf32, #tpu.memory_space<vmem>>, %arg3: memref<32x32xf32, #tpu.memory_space<vmem>>, %arg4: memref<1x32xf32, #tpu.memory_space<vmem>>, %arg5: memref<16x32xf32, #tpu.memory_space<vmem>>) attributes {dimension_semantics = [#tpu.dimension_semantics<parallel>, #tpu.dimension_semantics<parallel>], iteration_bounds = array<i64: 1, 1>, scalar_prefetch = 0 : i64, scratch_operands = 0 : i64, tpu.core_type = #tpu.core_type<tc>, window_params = [{transform_indices = @transform_0, window_bounds = array<i64: 16, 32>}, {transform_indices = @transform_1, window_bounds = array<i64: 32, 32>}, {transform_indices = @transform_2, window_bounds = array<i64: 1, 32>}, {transform_indices = @transform_3, window_bounds = array<i64: 16, 32>}]} {
    %c0 = arith.constant 0 : index
    %c0_0 = arith.constant 0 : index
    %0 = vector.load %arg2[%c0, %c0_0] : memref<16x32xf32, #tpu.memory_space<vmem>>, vector<16x32xf32>
    %c0_1 = arith.constant 0 : index
    %c0_2 = arith.constant 0 : index
    %1 = vector.load %arg3[%c0_1, %c0_2] : memref<32x32xf32, #tpu.memory_space<vmem>>, vector<32x32xf32>
    %cst = arith.constant dense<0.000000e+00> : vector<16x32xf32>
    %2 = tpu.matmul %0, %1, %cst {dimension_numbers = #tpu.dot_dimension_numbers<[1], [0], [0], [1], [0, 0, 1, 1], [], []>} : vector<16x32xf32>, vector<32x32xf32>, vector<16x32xf32> -> vector<16x32xf32>
    %c0_3 = arith.constant 0 : index
    %c0_4 = arith.constant 0 : index
    %3 = vector.load %arg4[%c0_3, %c0_4] : memref<1x32xf32, #tpu.memory_space<vmem>>, vector<1x32xf32>
    %4 = vector.broadcast %3 : vector<1x32xf32> to vector<16x32xf32>
    %5 = arith.addf %2, %4 : vector<16x32xf32>
    %cst_5 = arith.constant 5.000000e-01 : f32
    %6 = vector.broadcast %cst_5 : f32 to vector<16x32xf32>
    %7 = arith.mulf %6, %5 : vector<16x32xf32>
    %cst_6 = arith.constant 0.707106769 : f32
    %8 = vector.broadcast %cst_6 : f32 to vector<16x32xf32>
    %9 = arith.mulf %5, %8 : vector<16x32xf32>
    %10 = math.erf %9 : vector<16x32xf32>
    %cst_7 = arith.constant 1.000000e+00 : f32
    %11 = vector.broadcast %cst_7 : f32 to vector<16x32xf32>
    %12 = arith.addf %11, %10 : vector<16x32xf32>
    %13 = arith.mulf %7, %12 : vector<16x32xf32>
    %c0_8 = arith.constant 0 : index
    %c0_9 = arith.constant 0 : index
    %14 = vector.load %arg5[%c0_8, %c0_9] : memref<16x32xf32, #tpu.memory_space<vmem>>, vector<16x32xf32>
    tpu.vector_store %arg5[%c0_8, %c0_9], %13 {strides = array<i32>} : memref<16x32xf32, #tpu.memory_space<vmem>>, vector<16x32xf32>,
    return
  }
  func.func @transform_0(%arg0: i32, %arg1: i32) -> (i32, i32) {
    %c0_i32 = arith.constant 0 : i32
    %c0_i32_0 = arith.constant 0 : i32
    return %arg0, %c0_i32 : i32, i32
  }
  func.func @transform_1(%arg0: i32, %arg1: i32) -> (i32, i32) {
    %c0_i32 = arith.constant 0 : i32
    %c0_i32_0 = arith.constant 0 : i32
    return %c0_i32, %arg1 : i32, i32
  }
  func.func @transform_2(%arg0: i32, %arg1: i32) -> (i32, i32) {
    %c0_i32 = arith.constant 0 : i32
    %c0_i32_0 = arith.constant 0 : i32
    return %c0_i32, %arg1 : i32, i32
  }
  func.func @transform_3(%arg0: i32, %arg1: i32) -> (i32, i32) {
    %c0_i32 = arith.constant 0 : i32
    return %arg0, %arg1 : i32, i32
  }
}

</mosaic_0001>

<bundles_post_ra>
// kernel: tpu_custom_call.1
= control target key start
LH: loop header
LB: loop body
LE: loop exit
PB: predicated region body
PF: predicated region fallthrough
CT: control target
= control target key end

     0   :  { %8 = vsyncpa [#allocation3], 0  ;;  %s354_s0 = inlined_call_operand.hbm [shape: f32[16,32], index: 0, kind: input, shape index: {}]   ;;  %s355_s1 = inlined_call_operand.hbm [shape: f32[32,32], index: 1, kind: input, shape index: {}]   ;;  %s356_s2 = inlined_call_operand.vmem [shape: f32[1,32], index: 2, kind: input, shape index: {}]   ;;  %s357_s3 = inlined_call_operand.hbm [shape: f32[16,32], index: 3, kind: output, shape index: {}]  }
   0x1   :  { %9 = vsyncpa [#allocation6], 0 }
   0x2   :  { %10 = vsyncpa [#allocation4], 0  ;;  %s277_s12 = smov [#allocation2]   ;;  %s205_s16 = scalar_lea.hbm %s354_s0, 256 }
   0x3   :  { %s16_s13 = sshll.u32 %s277_s12, 4  ;;  %p206_p0 = scmp.ne.s32.totalorder %s354_s0, %s205_s16  ;;  %s17_s13 = int_to_ptr.vmem [resolvable:$true] %s16_s13 }
   0x4   :  { %p209_p1 = scmp.lt.u32.totalorder %s205_s16, %s354_s0 }
   0x6   :  { %p211_p2 = pnand %p209_p1, %p206_p0 }
   0x8   :  { %214 = shalt.err (!%p211_p2)
}
   0x9   :  { %s215_s21 = scalar_lea.vmem %s17_s13, 256  ;;  %p220_p4 = scmp.lt.s32.totalorder %s17_s13, %s17_s13 }
   0xa   :  { %p216_p3 = scmp.ne.s32.totalorder %s17_s13, %s215_s21  ;;  %p221_p5 = scmp.lt.s32.totalorder %s215_s21, %s215_s21 }
   0xc   :  { %p222_p6 = por %p221_p5, %p220_p4 }
   0xe   :  { %p223_p7 = pnand %p222_p6, %p216_p3 }
  0x10   :  { %226 = shalt.err (!%p223_p7)
}
  0x11   :  { %s278_s22 = smov 128   ;;  %s279_s23 = smov 8  }
  0x12   :  { %22 = dma.hbm_to_vmem [thread:$0]  %s354_s0, 256, %s17_s13, [#allocation3], %s278_s22, %s278_s22, %s279_s23  }
  0x13   :  { %s280_s26 = smov [#allocation5]   ;;  %s227_s30 = scalar_lea.hbm %s355_s1, 512 }
  0x14   :  { %s28_s27 = sshll.u32 %s280_s26, 4  ;;  %p228_p8 = scmp.ne.s32.totalorder %s355_s1, %s227_s30  ;;  %s29_s27 = int_to_ptr.vmem [resolvable:$true] %s28_s27 }
  0x15   :  { %p231_p9 = scmp.lt.u32.totalorder %s227_s30, %s355_s1 }
  0x17   :  { %p233_p10 = pnand %p231_p9, %p228_p8 }
  0x19   :  { %236 = shalt.err (!%p233_p10)
}
  0x1a   :  { %s237_s8 = scalar_lea.vmem %s29_s27, 512  ;;  %p242_p12 = scmp.lt.s32.totalorder %s29_s27, %s29_s27 }
  0x1b   :  { %p238_p11 = scmp.ne.s32.totalorder %s29_s27, %s237_s8  ;;  %p243_p13 = scmp.lt.s32.totalorder %s237_s8, %s237_s8 }
  0x1d   :  { %p244_p0 = por %p243_p13, %p242_p12 }
  0x1f   :  { %p245_p1 = pnand %p244_p0, %p238_p11 }
  0x21   :  { %248 = shalt.err (!%p245_p1)
}
  0x22   :  { %34 = dma.hbm_to_vmem [thread:$0]  %s355_s1, 512, %s29_s27, [#allocation6], %s278_s22, %s278_s22, %s279_s23  }
  0x23   :  { %271 = dma.done.wait [#allocation3], 256  }
  0x24   :  { %272 = vsyncadd [#allocation3], 4294967040 }
  0x25   :  { %273 = dma.done.wait [#allocation6], 512  }
  0x26   :  { %274 = vsyncadd [#allocation6], 4294966784  ;;  %vm56_vm0 = vcmask 261120   ;;  %v45_v0 = vld [vmem:[#allocation5] sm:$0xff]  ;;  %v46_v1 = vld [vmem:[#allocation5 + $0x8] sm:$0xff]  ;;  %s281_s11 = smov [#allocation7]  }
  0x27   :  { %v47_v2 = vld [vmem:[#allocation5 + $0x10] sm:$0xff]  ;;  %v188_v3 = vpack.c.bf16 %v46_v1, %v45_v0  ;;  %v48_v4 = vld [vmem:[#allocation5 + $0x18] sm:$0xff]  ;;  %s155_s12 = sshll.u32 %s281_s11, 4  ;;  %s156_s12 = int_to_ptr.vmem [resolvable:$true] %s155_s12 }
  0x28   :  { %v43_v5 = vld [vmem:[#allocation2] sm:$0xff]  ;;  %v192_v6 = vpack.c.bf16 %v48_v4, %v47_v2  ;;  %v44_v7 = vld [vmem:[#allocation2 + $0x8] sm:$0xff]  ;;  %p254_p3 = scmp.lt.s32.totalorder %s156_s12, %s156_s12 }
  0x29   :  { %185 = vmatprep.mubr.msk.f32.mxu0 %vm56_vm0, %v43_v5  ;;  %189 = vmatprep.subr.bf16.mxu0 %v188_v3  ;;  %v168_v8 = vld [vmem:[%s356_s2] ss:$0 sm:$0xff]  ;;  %s249_s2 = scalar_lea.vmem %s156_s12, 256 }
  0x2a   :  { %191 = vmatpush3.bf16.msra.mxu0 %v188_v3  ;;  %p250_p2 = scmp.ne.s32.totalorder %s156_s12, %s249_s2  ;;  %p255_p4 = scmp.lt.s32.totalorder %s249_s2, %s249_s2 }
  0x2b   :  { %193 = vmatprep.subr.bf16.mxu0 %v192_v6 }
  0x2c   :  { %p256_p5 = por %p255_p4, %p254_p3 }
  0x2e   :  { %195 = vmatpush3.bf16.msra.mxu0 %v192_v6  ;;  %p257_p6 = pnand %p256_p5, %p250_p2 }
  0x31   :  { %186 = vmatmul.mubr.msk.f32.vlgmr.msra.gmra.mrb[0].mxu0 %vm56_vm0, %v44_v7 }
 0x104   :  { %v187_v9 = vpop.f32.mrb[0].mxu0 }
 0x105   :  { %v135_v10 = vadd.f32 %v187_v9, %v168_v8  ;;  %v129_v11 = vpop.f32.mrb[1].mxu0 }
 0x106   :  { %v130_v12 = vadd.f32 %v168_v8, %v129_v11 }
 0x107   :  { %v141_v13 = vmul.f32 0.70710677, %v135_v10  ;;  %v139_v17 = vmul.f32 0.5, %v135_v10 }
 0x108   :  { %v140_v14 = vmul.f32 0.70710677, %v130_v12  ;;  %v138_v19 = vmul.f32 0.5, %v130_v12 }
 0x109   :  { %201 = verf.f32 %v141_v13 }
 0x10a   :  { %203 = verf.f32 %v140_v14 }
 0x113   :  { %v202_v15 = vpop.eup %201 }
 0x114   :  { %v204_v16 = vpop.eup %203  ;;  %v145_v18 = vadd.f32 1.0, %v202_v15 }
 0x115   :  { %v144_v20 = vadd.f32 1.0, %v204_v16 }
 0x116   :  { %v147_v21 = vmul.f32 %v145_v18, %v139_v17 }
 0x117   :  { %v146_v22 = vmul.f32 %v144_v20, %v138_v19 }
 0x118   :  { %149 = vst.msk [vmem:[#allocation7 + $0x8] sm:$0xff] %vm56_vm0, %v147_v21 }
 0x119   :  { %148 = vst.msk [vmem:[#allocation7] sm:$0xff] %vm56_vm0, %v146_v22 }
 0x11a   :  { %260 = shalt.err (!%p257_p6)
}
 0x11b   :  { %s261_s15 = scalar_lea.hbm %s357_s3, 256 }
 0x11c   :  { %p262_p7 = scmp.ne.s32.totalorder %s357_s3, %s261_s15  ;;  %p265_p8 = scmp.lt.u32.totalorder %s261_s15, %s357_s3 }
 0x11e   :  { %p267_p9 = pnand %p265_p8, %p262_p7 }
 0x120   :  { %270 = shalt.err (!%p267_p9)
}
 0x121   :  { %161 = dma.vmem_to_hbm [thread:$0]  %s156_s12, 256, %s357_s3, [#allocation4], %s278_s22, %s278_s22, %s279_s23  }
 0x122   :  { %275 = dma.done.wait [#allocation4], 256  }
 0x123   :  { %276 = vsyncadd [#allocation4], 4294967040 }
 0x124   :  { %165 = vsyncpa [#allocation3], 1 }
 0x125   :  { %166 = vsyncpa [#allocation6], 1 }
 0x126   :  { %167 = vsyncpa [#allocation4], 1 }

</bundles_post_ra>
